<compile_context>
chip_gen: v7x
topology: tpu7x:2x2x1
jax: 0.10.0
libtpu: 0.0.40
codegen_flags: <defaults>
</compile_context>

<pallas_src>
import math
import functools

import jax
import jax.numpy as jnp
from jax.experimental import pallas as pl
from jax.experimental.pallas import tpu as pltpu

_GELU_C = math.sqrt(2.0 / math.pi)


def _gelu_tanh(x):
    # 0.5 * x * (1 + tanh(sqrt(2/pi) * (x + 0.044715 * x^3)))  (x^3 reuses x*x)
    x2 = x * x
    return 0.5 * x * (1.0 + jnp.tanh(_GELU_C * (x + 0.044715 * (x * x2))))


def mlp_kernel(x_ref, w1_ref, b1_ref, w2_ref, b2_ref, o_ref, acc_ref):
    # x_ref:  (tm, E)   tile of tokens
    # w1_ref: (E, th)   fc1 weight chunk (transposed vs. torch layout)
    # b1_ref: (1, th)
    # w2_ref: (th, E)   fc2 weight chunk (transposed vs. torch layout)
    # b2_ref: (1, E)
    # acc_ref:(tm, E)   f32 fc2 accumulator, resident across the H axis
    j = pl.program_id(1)

    @pl.when(j == 0)
    def _():
        acc_ref[...] = jnp.zeros_like(acc_ref)

    # fc1 on this H chunk: native-dtype operands, f32 accumulation on MXU.
    h = jnp.dot(x_ref[...], w1_ref[...], preferred_element_type=jnp.float32)
    h = h + b1_ref[...].astype(jnp.float32)

    # dropout1 (eval: identity) -> GELU (tanh approximation) in f32.
    h = _gelu_tanh(h)

    # Partial fc2 contribution from this H chunk, accumulated in f32.
    acc_ref[...] += jnp.dot(h.astype(w2_ref.dtype), w2_ref[...],
                            preferred_element_type=jnp.float32)

    @pl.when(j == pl.num_programs(1) - 1)
    def _():
        # fc2 bias + dropout2 (eval: identity)
        o_ref[...] = (acc_ref[...] + b2_ref[...].astype(jnp.float32)).astype(o_ref.dtype)


def _round_up(x, m):
    return ((x + m - 1) // m) * m


@functools.partial(jax.jit, static_argnames=("tm_max", "th_max"))
def mlp_forward(x, w1, b1, w2, b2, *, tm_max=256, th_max=512):
    """x: (B, N, E); w1: (E, H); b1: (H,); w2: (H, E); b2: (E,). Returns (B, N, E)."""
    B, N, E = x.shape
    E_in, H = w1.shape
    assert E_in == E and w2.shape == (H, E)
    M = B * N

    # Token tile: as big as possible up to tm_max, multiple of 8 (sublane).
    tm = min(tm_max, _round_up(M, 8))
    M_pad = _round_up(M, tm)

    # Hidden tile: tile H only when it divides cleanly into lane-aligned chunks,
    # otherwise keep the whole H resident (small-H case).
    th = th_max if (th_max % 128 == 0 and H % th_max == 0) else H

    x2d = x.reshape(M, E)
    if M_pad != M:
        x2d = jnp.pad(x2d, ((0, M_pad - M), (0, 0)))
    b1_2d = b1.reshape(1, H)
    b2_2d = b2.reshape(1, E)

    # Explicit scoped-VMEM budget: double-buffered weight/bias/io tiles + f32
    # accumulator + hidden working set, with margin; floored at the 32 MiB
    # default and capped well under physical VMEM.
    bx = x.dtype.itemsize
    bw = w1.dtype.itemsize
    resident = 2 * (E * th + th * E + th + E) * bw          # weights + biases (dbl-buf)
    io = 2 * tm * E * bx + 2 * tm * E * x.dtype.itemsize    # x tile + out tile (dbl-buf)
    scratch = tm * E * 4 + 2 * tm * th * 4                  # accumulator + hidden slab
    vmem_limit = int(min(max(2 * (resident + io + scratch), 32 * 1024 * 1024),
                         96 * 1024 * 1024))

    grid = (M_pad // tm, H // th)

    out = pl.pallas_call(
        mlp_kernel,
        out_shape=jax.ShapeDtypeStruct((M_pad, E), x.dtype),
        grid_spec=pltpu.PrefetchScalarGridSpec(
            num_scalar_prefetch=0,
            grid=grid,
            in_specs=[
                pl.BlockSpec((tm, E), lambda i, j: (i, 0)),   # x tile
                pl.BlockSpec((E, th), lambda i, j: (0, j)),   # fc1 weight chunk
                pl.BlockSpec((1, th), lambda i, j: (0, j)),   # fc1 bias chunk
                pl.BlockSpec((th, E), lambda i, j: (j, 0)),   # fc2 weight chunk
                pl.BlockSpec((1, E), lambda i, j: (0, 0)),    # fc2 bias
            ],
            out_specs=pl.BlockSpec((tm, E), lambda i, j: (i, 0)),
            scratch_shapes=[pltpu.VMEM((tm, E), jnp.float32)],
        ),
        compiler_params=pltpu.CompilerParams(
            dimension_semantics=("parallel", "arbitrary"),
            vmem_limit_bytes=vmem_limit),
    )(x2d, w1, b1_2d, w2, b2_2d)

    if M_pad != M:
        out = out[:M]
    return out.reshape(B, N, E)


def _reference(x, w1, b1, w2, b2):
    h = jnp.einsum("bne,eh->bnh", x, w1) + b1
    h = _gelu_tanh(h)
    return jnp.einsum("bnh,he->bne", h, w2) + b2


if __name__ == "__main__":
    # --- test 1: small f32 shapes, tight tolerance -------------------------
    B, N = 2, 8          # batch, sequence length
    E, H = 32, 64        # embed_dim, mlp_dim

    key = jax.random.PRNGKey(0)
    kx, k1, kb1, k2, kb2 = jax.random.split(key, 5)

    x = jax.random.normal(kx, (B, N, E), dtype=jnp.float32)

    # torch nn.Linear-style uniform init, stored pre-transposed as (in, out).
    lim1 = 1.0 / math.sqrt(E)
    lim2 = 1.0 / math.sqrt(H)
    w1 = jax.random.uniform(k1, (E, H), minval=-lim1, maxval=lim1, dtype=jnp.float32)
    b1 = jax.random.uniform(kb1, (H,), minval=-lim1, maxval=lim1, dtype=jnp.float32)
    w2 = jax.random.uniform(k2, (H, E), minval=-lim2, maxval=lim2, dtype=jnp.float32)
    b2 = jax.random.uniform(kb2, (E,), minval=-lim2, maxval=lim2, dtype=jnp.float32)

    out = mlp_forward(x, w1, b1, w2, b2)
    jax.block_until_ready(out)

    ref = _reference(x, w1, b1, w2, b2)
    assert out.shape == (B, N, E)
    assert jnp.allclose(out, ref, atol=1e-5, rtol=1e-5), "f32 mismatch vs reference"

    # --- test 2: bf16 weights/activations, padded multi-tile M grid --------
    B2, N2, E2, H2 = 2, 200, 128, 256     # M=400 -> padded to 512, grid_m=2
    key2 = jax.random.PRNGKey(1)
    kx2, k12, kb12, k22, kb22 = jax.random.split(key2, 5)
    l1, l2 = 1.0 / math.sqrt(E2), 1.0 / math.sqrt(H2)

    xb = jax.random.normal(kx2, (B2, N2, E2), dtype=jnp.float32).astype(jnp.bfloat16)
    w1b = jax.random.uniform(k12, (E2, H2), minval=-l1, maxval=l1).astype(jnp.bfloat16)
    b1b = jax.random.uniform(kb12, (H2,), minval=-l1, maxval=l1).astype(jnp.bfloat16)
    w2b = jax.random.uniform(k22, (H2, E2), minval=-l2, maxval=l2).astype(jnp.bfloat16)
    b2b = jax.random.uniform(kb22, (E2,), minval=-l2, maxval=l2).astype(jnp.bfloat16)

    outb = mlp_forward(xb, w1b, b1b, w2b, b2b)
    jax.block_until_ready(outb)

    refb = _reference(xb.astype(jnp.float32), w1b.astype(jnp.float32),
                      b1b.astype(jnp.float32), w2b.astype(jnp.float32),
                      b2b.astype(jnp.float32))
    assert outb.shape == (B2, N2, E2)
    assert jnp.allclose(outb.astype(jnp.float32), refb, atol=5e-2, rtol=5e-2), \
        "bf16 mismatch vs f32 reference"

    print("KERNEL_OK")
</pallas_src>

<mosaic_0001>
module attributes {stable_mosaic.version = 11 : i64} {
  func.func @mlp_kernel(%arg0: i32, %arg1: i32, %arg2: memref<16x32xf32, #tpu.memory_space<vmem>>, %arg3: memref<32x64xf32, #tpu.memory_space<vmem>>, %arg4: memref<1x64xf32, #tpu.memory_space<vmem>>, %arg5: memref<64x32xf32, #tpu.memory_space<vmem>>, %arg6: memref<1x32xf32, #tpu.memory_space<vmem>>, %arg7: memref<16x32xf32, #tpu.memory_space<vmem>>, %arg8: memref<16x32xf32, #tpu.memory_space<vmem>>) attributes {dimension_semantics = [#tpu.dimension_semantics<parallel>, #tpu.dimension_semantics<arbitrary>], iteration_bounds = array<i64: 1, 1>, scalar_prefetch = 0 : i64, scratch_operands = 1 : i64, tpu.core_type = #tpu.core_type<tc>, window_params = [{transform_indices = @transform_0, window_bounds = array<i64: 16, 32>}, {transform_indices = @transform_1, window_bounds = array<i64: 32, 64>}, {transform_indices = @transform_2, window_bounds = array<i64: 1, 64>}, {transform_indices = @transform_3, window_bounds = array<i64: 64, 32>}, {pipeline_mode = #tpu.pipeline_mode<synchronous>, transform_indices = @transform_4, window_bounds = array<i64: 1, 32>}, {transform_indices = @transform_5, window_bounds = array<i64: 16, 32>}]} {
    %c0_i32 = arith.constant 0 : i32
    %0 = arith.cmpi eq, %arg1, %c0_i32 : i32
    %1 = arith.extui %0 : i1 to i32
    %c0_i32_0 = arith.constant 0 : i32
    %2 = arith.cmpi ne, %1, %c0_i32_0 : i32
    scf.if %2 {
      %cst_19 = arith.constant 0.000000e+00 : f32
      %30 = vector.broadcast %cst_19 : f32 to vector<16x32xf32>
      %c0_20 = arith.constant 0 : index
      %c0_21 = arith.constant 0 : index
      %31 = vector.load %arg8[%c0_20, %c0_21] : memref<16x32xf32, #tpu.memory_space<vmem>>, vector<16x32xf32>
      tpu.vector_store %arg8[%c0_20, %c0_21], %30 {strides = array<i32>} : memref<16x32xf32, #tpu.memory_space<vmem>>, vector<16x32xf32>,
    } else {
    }
    %c0 = arith.constant 0 : index
    %c0_1 = arith.constant 0 : index
    %3 = vector.load %arg2[%c0, %c0_1] : memref<16x32xf32, #tpu.memory_space<vmem>>, vector<16x32xf32>
    %c0_2 = arith.constant 0 : index
    %c0_3 = arith.constant 0 : index
    %4 = vector.load %arg3[%c0_2, %c0_3] : memref<32x64xf32, #tpu.memory_space<vmem>>, vector<32x64xf32>
    %cst = arith.constant dense<0.000000e+00> : vector<16x64xf32>
    %5 = tpu.matmul %3, %4, %cst {dimension_numbers = #tpu.dot_dimension_numbers<[1], [0], [0], [1], [0, 0, 1, 1], [], []>} : vector<16x32xf32>, vector<32x64xf32>, vector<16x64xf32> -> vector<16x64xf32>
    %c0_4 = arith.constant 0 : index
    %c0_5 = arith.constant 0 : index
    %6 = vector.load %arg4[%c0_4, %c0_5] : memref<1x64xf32, #tpu.memory_space<vmem>>, vector<1x64xf32>
    %7 = vector.broadcast %6 : vector<1x64xf32> to vector<16x64xf32>
    %8 = arith.addf %5, %7 : vector<16x64xf32>
    %9 = arith.mulf %8, %8 : vector<16x64xf32>
    %cst_6 = arith.constant 5.000000e-01 : f32
    %10 = vector.broadcast %cst_6 : f32 to vector<16x64xf32>
    %11 = arith.mulf %10, %8 : vector<16x64xf32>
    %12 = arith.mulf %8, %9 : vector<16x64xf32>
    %cst_7 = arith.constant 4.471500e-02 : f32
    %13 = vector.broadcast %cst_7 : f32 to vector<16x64xf32>
    %14 = arith.mulf %13, %12 : vector<16x64xf32>
    %15 = arith.addf %8, %14 : vector<16x64xf32>
    %cst_8 = arith.constant 0.797884583 : f32
    %16 = vector.broadcast %cst_8 : f32 to vector<16x64xf32>
    %17 = arith.mulf %16, %15 : vector<16x64xf32>
    %18 = math.tanh %17 : vector<16x64xf32>
    %cst_9 = arith.constant 1.000000e+00 : f32
    %19 = vector.broadcast %cst_9 : f32 to vector<16x64xf32>
    %20 = arith.addf %19, %18 : vector<16x64xf32>
    %21 = arith.mulf %11, %20 : vector<16x64xf32>
    %c0_10 = arith.constant 0 : index
    %c0_11 = arith.constant 0 : index
    %22 = vector.load %arg8[%c0_10, %c0_11] : memref<16x32xf32, #tpu.memory_space<vmem>>, vector<16x32xf32>
    %c0_12 = arith.constant 0 : index
    %c0_13 = arith.constant 0 : index
    %23 = vector.load %arg5[%c0_12, %c0_13] : memref<64x32xf32, #tpu.memory_space<vmem>>, vector<64x32xf32>
    %cst_14 = arith.constant dense<0.000000e+00> : vector<16x32xf32>
    %24 = tpu.matmul %21, %23, %cst_14 {dimension_numbers = #tpu.dot_dimension_numbers<[1], [0], [0], [1], [0, 0, 1, 1], [], []>} : vector<16x64xf32>, vector<64x32xf32>, vector<16x32xf32> -> vector<16x32xf32>
    %25 = arith.addf %22, %24 : vector<16x32xf32>
    %c0_15 = arith.constant 0 : index
    %c0_16 = arith.constant 0 : index
    %26 = vector.load %arg8[%c0_15, %c0_16] : memref<16x32xf32, #tpu.memory_space<vmem>>, vector<16x32xf32>
    tpu.vector_store %arg8[%c0_15, %c0_16], %25 {strides = array<i32>} : memref<16x32xf32, #tpu.memory_space<vmem>>, vector<16x32xf32>,
    %c0_i32_17 = arith.constant 0 : i32
    %27 = arith.cmpi eq, %arg1, %c0_i32_17 : i32
    %28 = arith.extui %27 : i1 to i32
    %c0_i32_18 = arith.constant 0 : i32
    %29 = arith.cmpi ne, %28, %c0_i32_18 : i32
    scf.if %29 {
      %c0_19 = arith.constant 0 : index
      %c0_20 = arith.constant 0 : index
      %30 = vector.load %arg8[%c0_19, %c0_20] : memref<16x32xf32, #tpu.memory_space<vmem>>, vector<16x32xf32>
      %c0_21 = arith.constant 0 : index
      %c0_22 = arith.constant 0 : index
      %31 = vector.load %arg6[%c0_21, %c0_22] : memref<1x32xf32, #tpu.memory_space<vmem>>, vector<1x32xf32>
      %32 = vector.broadcast %31 : vector<1x32xf32> to vector<16x32xf32>
      %33 = arith.addf %30, %32 : vector<16x32xf32>
      %c0_23 = arith.constant 0 : index
      %c0_24 = arith.constant 0 : index
      %34 = vector.load %arg7[%c0_23, %c0_24] : memref<16x32xf32, #tpu.memory_space<vmem>>, vector<16x32xf32>
      tpu.vector_store %arg7[%c0_23, %c0_24], %33 {strides = array<i32>} : memref<16x32xf32, #tpu.memory_space<vmem>>, vector<16x32xf32>,
    } else {
    }
    return
  }
  func.func @transform_0(%arg0: i32, %arg1: i32) -> (i32, i32) {
    %c0_i32 = arith.constant 0 : i32
    %c0_i32_0 = arith.constant 0 : i32
    return %arg0, %c0_i32 : i32, i32
  }
  func.func @transform_1(%arg0: i32, %arg1: i32) -> (i32, i32) {
    %c0_i32 = arith.constant 0 : i32
    %c0_i32_0 = arith.constant 0 : i32
    return %c0_i32, %arg1 : i32, i32
  }
  func.func @transform_2(%arg0: i32, %arg1: i32) -> (i32, i32) {
    %c0_i32 = arith.constant 0 : i32
    %c0_i32_0 = arith.constant 0 : i32
    return %c0_i32, %arg1 : i32, i32
  }
  func.func @transform_3(%arg0: i32, %arg1: i32) -> (i32, i32) {
    %c0_i32 = arith.constant 0 : i32
    %c0_i32_0 = arith.constant 0 : i32
    return %arg1, %c0_i32 : i32, i32
  }
  func.func @transform_4(%arg0: i32, %arg1: i32) -> (i32, i32) {
    %c0_i32 = arith.constant 0 : i32
    %c0_i32_0 = arith.constant 0 : i32
    %c0_i32_1 = arith.constant 0 : i32
    return %c0_i32, %c0_i32_0 : i32, i32
  }
  func.func @transform_5(%arg0: i32, %arg1: i32) -> (i32, i32) {
    %c0_i32 = arith.constant 0 : i32
    %c0_i32_0 = arith.constant 0 : i32
    return %arg0, %c0_i32 : i32, i32
  }
}

</mosaic_0001>

<bundles_post_ra>
// kernel: mlp_forward.1
= control target key start
LH: loop header
LB: loop body
LE: loop exit
PB: predicated region body
PF: predicated region fallthrough
CT: control target
= control target key end

     0   :  { %vm25_vm0 = vcmask 261120   ;;  %s479_s0 = inlined_call_operand.vmem [shape: f32[16,32], index: 0, kind: input, shape index: {}]   ;;  %s480_s1 = inlined_call_operand.vmem [shape: f32[32,64], index: 1, kind: input, shape index: {}]   ;;  %s481_s2 = inlined_call_operand.vmem [shape: f32[1,64], index: 2, kind: input, shape index: {}]   ;;  %s482_s3 = inlined_call_operand.vmem [shape: f32[64,32], index: 3, kind: input, shape index: {}]   ;;  %s483_s4 = inlined_call_operand.vmem [shape: f32[1,32], index: 4, kind: input, shape index: {}]   ;;  %s484_s5 = inlined_call_operand.hbm [shape: f32[16,32], index: 5, kind: output, shape index: {}]  }
   0x1   :  { %v30_v0 = vld [vmem:[%s480_s1] sm:$0xff]  ;;  %v31_v1 = vld [vmem:[%s480_s1 + $0x8] sm:$0xff]  ;;  %v32_v2 = vld [vmem:[%s480_s1 + $0x10] sm:$0xff] }
   0x2   :  { %v321_v3 = vpack.c.bf16 %v31_v1, %v30_v0  ;;  %v33_v4 = vld [vmem:[%s480_s1 + $0x18] sm:$0xff]  ;;  %v28_v5 = vld [vmem:[%s479_s0] sm:$0xff] }
   0x3   :  { %v325_v6 = vpack.c.bf16 %v33_v4, %v32_v2  ;;  %299 = vmatprep.mubr.msk.f32.mxu0 %vm25_vm0, %v28_v5 }
   0x4   :  { %10 = vsyncpa [#allocation4], 0  ;;  %322 = vmatprep.subr.bf16.mxu0 %v321_v3  ;;  %v29_v7 = vld [vmem:[%s479_s0 + $0x8] sm:$0xff]  ;;  %v143_v8 = vld [vmem:[%s482_s3] sm:$0xff]  ;;  %v377_v20 = vmov 0.0   ;;  %vm151_vm1 = vcmask 523264  }
   0x5   :  { %324 = vmatpush3.bf16.msra.mxu0 %v321_v3  ;;  %v144_v9 = vld [vmem:[%s482_s3 + $0x8] sm:$0xff]  ;;  %v145_v11 = vld [vmem:[%s482_s3 + $0x10] sm:$0xff]  ;;  %v146_v12 = vld [vmem:[%s482_s3 + $0x18] sm:$0xff]  ;;  %27 = vst.msk [vmem:[#allocation2 + $0x8] sm:$0xff] %vm25_vm0, %v377_v20  ;;  %s378_s21 = smov [#allocation3]  }
   0x6   :  { %326 = vmatprep.subr.bf16.mxu0 %v325_v6  ;;  %v329_v10 = vpack.c.bf16 %v144_v9, %v143_v8  ;;  %v147_v13 = vld [vmem:[%s482_s3 + $0x20] sm:$0xff]  ;;  %v333_v14 = vpack.c.bf16 %v146_v12, %v145_v11  ;;  %v148_v15 = vld [vmem:[%s482_s3 + $0x28] sm:$0xff]  ;;  %v149_v17 = vld [vmem:[%s482_s3 + $0x30] sm:$0xff]  ;;  %26 = vst.msk [vmem:[#allocation2] sm:$0xff] %vm25_vm0, %v377_v20  ;;  %s258_s22 = sshll.u32 %s378_s21, 4  ;;  %s259_s22 = int_to_ptr.vmem [resolvable:$true] %s258_s22 }
   0x7   :  { %v337_v16 = vpack.c.bf16 %v148_v15, %v147_v13  ;;  %v150_v18 = vld [vmem:[%s482_s3 + $0x38] sm:$0xff]  ;;  %v269_v21 = vld [vmem:[%s481_s2] ss:$0 sm:$0xff]  ;;  %s353_s23 = scalar_lea.vmem %s259_s22, 256  ;;  %p358_p1 = scmp.lt.s32.totalorder %s259_s22, %s259_s22 }
   0x8   :  { %330 = vmatprep.subr.bf16.mxu1 %v329_v10  ;;  %v341_v19 = vpack.c.bf16 %v150_v18, %v149_v17  ;;  %v274_v50 = vld [vmem:[%s483_s4] ss:$0 sm:$0xff]  ;;  %p354_p0 = scmp.ne.s32.totalorder %s259_s22, %s353_s23  ;;  %p359_p2 = scmp.lt.s32.totalorder %s353_s23, %s353_s23 }
   0x9   :  { %328 = vmatpush3.bf16.msra.mxu0 %v325_v6  ;;  %332 = vmatpush3.bf16.msra.mxu1 %v329_v10 }
   0xa   :  { %334 = vmatprep.subr.bf16.mxu1 %v333_v14  ;;  %p360_p3 = por %p359_p2, %p358_p1 }
   0xc   :  { %300 = vmatmul.mubr.msk.f32.vlgmr.msra.gmra.mrb[0].mxu0 %vm25_vm0, %v29_v7  ;;  %v142_v44 = vld [vmem:[#allocation2 + $0x8] sm:$0xff]  ;;  %p361_p4 = pnand %p360_p3, %p354_p0 }
   0xd   :  { %336 = vmatpush3.bf16.msra.mxu1 %v333_v14  ;;  %v141_v45 = vld [vmem:[#allocation2] sm:$0xff] }
   0xe   :  { %338 = vmatprep.subr.bf16.mxu1 %v337_v16 }
  0x11   :  { %340 = vmatpush3.bf16.msra.mxu1 %v337_v16 }
  0x12   :  { %342 = vmatprep.subr.bf16.mxu1 %v341_v19 }
  0x15   :  { %344 = vmatpush3.bf16.msra.mxu1 %v341_v19 }
  0xdf   :  { %v301_v22 = vpop.f32.mrb[0].mxu0 }
  0xe0   :  { %v120_v23 = vadd.f32 %v301_v22, %v269_v21  ;;  %v114_v24 = vpop.f32.mrb[1].mxu0 }
  0xe1   :  { %v115_v25 = vadd.f32 %v269_v21, %v114_v24 }
  0xe2   :  { %v124_v26 = vmul.f32 %v120_v23, %v120_v23  ;;  %v126_v41 = vmul.f32 0.5, %v120_v23 }
  0xe3   :  { %v123_v27 = vmul.f32 %v115_v25, %v115_v25  ;;  %v125_v39 = vmul.f32 0.5, %v115_v25 }
  0xe4   :  { %v128_v28 = vmul.f32 %v124_v26, %v120_v23 }
  0xe5   :  { %v127_v29 = vmul.f32 %v123_v27, %v115_v25 }
  0xe6   :  { %v130_v30 = vmul.f32 0.044715, %v128_v28 }
  0xe7   :  { %v129_v31 = vmul.f32 0.044715, %v127_v29 }
  0xe8   :  { %v132_v32 = vadd.f32 %v130_v30, %v120_v23 }
  0xe9   :  { %v131_v33 = vadd.f32 %v129_v31, %v115_v25 }
  0xea   :  { %v134_v34 = vmul.f32 0.7978846, %v132_v32 }
  0xeb   :  { %v133_v35 = vmul.f32 0.7978846, %v131_v33 }
  0xec   :  { %349 = vtanh.f32 %v134_v34 }
  0xed   :  { %351 = vtanh.f32 %v133_v35 }
  0xf6   :  { %v350_v36 = vpop.eup %349 }
  0xf7   :  { %v352_v37 = vpop.eup %351  ;;  %v138_v38 = vadd.f32 1.0, %v350_v36 }
  0xf8   :  { %v137_v40 = vadd.f32 1.0, %v352_v37 }
  0xf9   :  { %v140_v43 = vmul.f32 %v138_v38, %v126_v41 }
  0xfa   :  { %v139_v42 = vmul.f32 %v137_v40, %v125_v39 }
  0xfc   :  { %318 = vmatprep.mubr.msk.f32.mxu1 %vm151_vm1, %v139_v42 }
  0xfd   :  { %319 = vmatmul.mubr.msk.f32.vlgmr.msra.gmra.mrb[0].mxu1 %vm151_vm1, %v140_v43 }
 0x1d0   :  { %v320_v46 = vpop.f32.mrb[0].mxu1 }
 0x1d1   :  { %v234_v47 = vadd.f32 %v320_v46, %v142_v44  ;;  %v224_v48 = vpop.f32.mrb[1].mxu1 }
 0x1d2   :  { %v233_v49 = vadd.f32 %v224_v48, %v141_v45 }
 0x1d3   :  { %236 = vst.msk [vmem:[#allocation2 + $0x8] sm:$0xff] %vm25_vm0, %v234_v47 }
 0x1d4   :  { %235 = vst.msk [vmem:[#allocation2] sm:$0xff] %vm25_vm0, %v233_v49 }
 0x1da   :  { %v241_v51 = vld [vmem:[#allocation2 + $0x8] sm:$0xff] }
 0x1db   :  { %v240_v52 = vld [vmem:[#allocation2] sm:$0xff]  ;;  %v250_v53 = vadd.f32 %v274_v50, %v241_v51 }
 0x1dc   :  { %v249_v54 = vadd.f32 %v274_v50, %v240_v52 }
 0x1dd   :  { %252 = vst.msk [vmem:[#allocation3 + $0x8] sm:$0xff] %vm25_vm0, %v250_v53 }
 0x1de   :  { %251 = vst.msk [vmem:[#allocation3] sm:$0xff] %vm25_vm0, %v249_v54 }
 0x1df   :  { %364 = shalt.err (!%p361_p4)
}
 0x1e0   :  { %s365_s25 = scalar_lea.hbm %s484_s5, 256 }
 0x1e1   :  { %p366_p5 = scmp.ne.s32.totalorder %s484_s5, %s365_s25  ;;  %p369_p6 = scmp.lt.u32.totalorder %s365_s25, %s484_s5 }
 0x1e3   :  { %p371_p7 = pnand %p369_p6, %p366_p5 }
 0x1e5   :  { %374 = shalt.err (!%p371_p7)
}
 0x1e6   :  { %s379_s30 = smov 128   ;;  %s380_s1 = smov 8  }
 0x1e7   :  { %264 = dma.vmem_to_hbm [thread:$0]  %s259_s22, 256, %s484_s5, [#allocation4], %s379_s30, %s379_s30, %s380_s1  }
 0x1e8   :  { %375 = dma.done.wait [#allocation4], 256  }
 0x1e9   :  { %376 = vsyncadd [#allocation4], 4294967040 }
 0x1ea   :  { %268 = vsyncpa [#allocation4], 1 }

</bundles_post_ra>
